<compile_context>
chip_gen: v7x
topology: tpu7x:2x2x1
jax: 0.10.0
libtpu: 0.0.40
codegen_flags: <defaults>
</compile_context>

<pallas_src>
import math

import jax
import jax.numpy as jnp
from jax.experimental import pallas as pl
from jax.experimental.pallas import tpu as pltpu


_ROW_ALIGN = 16                    # bf16 sublane packing (2 rows per sublane)
_LANE = 128                        # lane width
_VMEM_BUDGET = 40 * 1024 * 1024    # conservative per-TC footprint target (fits v7x)
_VMEM_LIMIT = 48 * 1024 * 1024     # explicit scoped-VMEM limit for the kernel


def _gelu_erf(x):
    # HF BERT 'gelu' (exact erf form): x * 0.5 * (1 + erf(x / sqrt(2))).
    # Kept exact to preserve the module's forward semantics.
    # (On v5e the erf polynomial is VPU work; tanh-approx GELU would move it to
    #  the EUP slot if numerics allow.)
    return x * 0.5 * (1.0 + jax.lax.erf(x * (1.0 / math.sqrt(2.0))))


def _intermediate_kernel(x_ref, w_ref, b_ref, o_ref):
    # x_ref: (tm, H) bf16 ; w_ref: (H, tn) bf16 ; b_ref: (1, tn) f32 ; o_ref: (tm, tn)
    acc = jnp.dot(x_ref[...], w_ref[...], preferred_element_type=jnp.float32)
    acc = acc + b_ref[...]                                  # f32 bias broadcast
    o_ref[...] = _gelu_erf(acc).astype(o_ref.dtype)         # lane-dense full-tile store


def _round_up(x, m):
    return ((x + m - 1) // m) * m


def _resident_bytes(tm, H, I_pad, out_itemsize):
    # Conservative: assume default double-buffering for every operand (Buffered(1)
    # on W/bias only reduces this further when supported).
    w_b = 2 * H * I_pad * 2
    b_b = 2 * I_pad * 4
    x_b = 2 * tm * H * 2
    o_b = 2 * tm * I_pad * out_itemsize
    return w_b + b_b + x_b + o_b


def _tiled_bytes(tm, tn, H, out_itemsize):
    return 2 * (tm * H * 2 + H * tn * 2 + tn * 4 + tm * tn * out_itemsize)


def _choose_tm_resident(M, H, I_pad, out_itemsize):
    """Largest MXU/packing-aligned row tile whose resident-W footprint fits VMEM.
    Returns None if even the smallest tile does not fit (use column-tiled path)."""
    m_al = _round_up(M, _ROW_ALIGN)
    chosen = None
    for tm in (1024, 768, 512, 384, 256, 128, 64, 32, 16):
        if tm > m_al:
            continue
        if _resident_bytes(tm, H, I_pad, out_itemsize) <= _VMEM_BUDGET:
            chosen = tm
            break
    if chosen is None:
        return None
    # v7x megacore: prefer >= 2 grid steps along the "parallel" row axis.
    if (m_al // chosen) < 2 and m_al >= 2 * _ROW_ALIGN:
        chosen = _round_up((M + 1) // 2, _ROW_ALIGN)
    return chosen


def _choose_tiled(M, H, I_pad, out_itemsize):
    m_al = _round_up(M, _ROW_ALIGN)
    for tm in (512, 256, 128, 64, 32, 16):
        if tm > m_al:
            continue
        for tn in (1024, 512, 256, 128):
            if tn > I_pad:
                continue
            if _tiled_bytes(tm, tn, H, out_itemsize) <= _VMEM_BUDGET:
                return tm, tn
    return 16, 128


def bert_intermediate(hidden_states, w, b):
    """hidden_states: (B, S, H); w: (H, I) pre-transposed; b: (I,)."""
    B, S, H = hidden_states.shape
    Hw, I = w.shape
    assert Hw == H, "weight must be pre-transposed to (hidden, intermediate)"
    M = B * S
    out_dtype = hidden_states.dtype
    out_isz = jnp.dtype(out_dtype).itemsize

    I_lane = _round_up(I, _LANE)
    tm = _choose_tm_resident(M, H, I_lane, out_isz)
    resident = tm is not None
    if resident:
        tn = I_lane
    else:
        tm, tn = _choose_tiled(M, H, I_lane, out_isz)

    M_pad = _round_up(M, tm)
    I_pad = _round_up(I, tn)
    grid_m = M_pad // tm
    grid_n = I_pad // tn

    # Pad + cast at the boundary: bf16 activations/weights, f32 bias; the kernel
    # accumulates in f32 and applies bias + GELU in f32.
    x2d = hidden_states.reshape(M, H)
    if M_pad != M:
        x2d = jnp.pad(x2d, ((0, M_pad - M), (0, 0)))
    x2d = x2d.astype(jnp.bfloat16)

    wp, bp = w, b
    if I_pad != I:
        wp = jnp.pad(w, ((0, 0), (0, I_pad - I)))
        bp = jnp.pad(b, ((0, I_pad - I),))
    w_bf = wp.astype(jnp.bfloat16)
    b2d = bp.astype(jnp.float32).reshape(1, I_pad)

    def _cparams(sem):
        return pltpu.CompilerParams(dimension_semantics=sem,
                                    vmem_limit_bytes=_VMEM_LIMIT)

    if resident:
        def _run(single_buf_resident):
            def _spec(shape, imap, constant_block):
                if constant_block and single_buf_resident:
                    try:
                        # Constant-index operand: fetched once; request a single
                        # buffer to halve its VMEM footprint where supported.
                        return pl.BlockSpec(shape, imap,
                                            pipeline_mode=pl.Buffered(1))
                    except Exception:
                        return pl.BlockSpec(shape, imap)
                return pl.BlockSpec(shape, imap)

            return pl.pallas_call(
                _intermediate_kernel,
                out_shape=jax.ShapeDtypeStruct((M_pad, I_pad), out_dtype),
                grid_spec=pltpu.PrefetchScalarGridSpec(
                    num_scalar_prefetch=0,
                    grid=(grid_m,),
                    in_specs=[
                        _spec((tm, H), lambda i: (i, 0), False),       # activations
                        _spec((H, I_pad), lambda i: (0, 0), True),     # resident W
                        _spec((1, I_pad), lambda i: (0, 0), True),     # resident bias
                    ],
                    out_specs=pl.BlockSpec((tm, I_pad), lambda i: (i, 0)),
                ),
                compiler_params=_cparams(("parallel",)),
            )(x2d, w_bf, b2d)

        try:
            out = jax.block_until_ready(_run(True))
        except Exception:
            # pl.Buffered(1) not supported on this JAX/Mosaic version -> default
            # double-buffering (budget above already accounts for it).
            out = jax.block_until_ready(_run(False))
    else:
        # Column-tiled fallback (weights too large to hold resident). Grid is
        # ordered (col, row) so each W column panel has a constant block index
        # over the inner row axis and is fetched from HBM only once.
        out = pl.pallas_call(
            _intermediate_kernel,
            out_shape=jax.ShapeDtypeStruct((M_pad, I_pad), out_dtype),
            grid_spec=pltpu.PrefetchScalarGridSpec(
                num_scalar_prefetch=0,
                grid=(grid_n, grid_m),
                in_specs=[
                    pl.BlockSpec((tm, H), lambda j, i: (i, 0)),
                    pl.BlockSpec((H, tn), lambda j, i: (0, j)),
                    pl.BlockSpec((1, tn), lambda j, i: (0, j)),
                ],
                out_specs=pl.BlockSpec((tm, tn), lambda j, i: (i, j)),
            ),
            compiler_params=_cparams(("parallel", "parallel")),
        )(x2d, w_bf, b2d)

    return out[:M, :I].reshape(B, S, I)


def _reference(hidden_states, w, b):
    # Same numerics as the kernel: bf16 inputs, f32 accumulation, exact erf GELU.
    xb = hidden_states.astype(jnp.bfloat16)
    wb = w.astype(jnp.bfloat16)
    h = jnp.dot(xb, wb, preferred_element_type=jnp.float32) + b.astype(jnp.float32)
    return jax.nn.gelu(h, approximate=False).astype(hidden_states.dtype)


if __name__ == "__main__":
    # config: hidden_size=32, intermediate_size=128, hidden_act='gelu'
    B, S, H, I = 2, 8, 32, 128

    key = jax.random.PRNGKey(0)
    kx, kw, kb = jax.random.split(key, 3)

    x = jax.random.normal(kx, (B, S, H), dtype=jnp.float32)
    # PyTorch Linear weight is (out, in) = (I, H); store pre-transposed (H, I).
    w_torch = jax.random.normal(kw, (I, H), dtype=jnp.float32) * 0.05
    w = w_torch.T
    b = jax.random.normal(kb, (I,), dtype=jnp.float32) * 0.05

    # TODO(synk): PrunableLinear weight-mask pruning is not modeled (a pruned
    # weight is just a masked dense weight; pre-apply the mask to `w` if needed).

    out = jax.block_until_ready(bert_intermediate(x, w, b))

    ref = _reference(x, w, b)
    assert out.shape == (B, S, I)
    assert jnp.allclose(out, ref, atol=2e-2, rtol=2e-2), "mismatch vs reference"

    print("KERNEL_OK")
</pallas_src>

<mosaic_0001>
module attributes {stable_mosaic.version = 11 : i64} {
  func.func @_intermediate_kernel(%arg0: i32, %arg1: memref<16x32xbf16, #tpu.memory_space<vmem>>, %arg2: memref<32x128xbf16, #tpu.memory_space<vmem>>, %arg3: memref<1x128xf32, #tpu.memory_space<vmem>>, %arg4: memref<16x128xf32, #tpu.memory_space<vmem>>) attributes {dimension_semantics = [#tpu.dimension_semantics<parallel>], iteration_bounds = array<i64: 1>, scalar_prefetch = 0 : i64, scratch_operands = 0 : i64, tpu.core_type = #tpu.core_type<tc>, window_params = [{transform_indices = @transform_0, window_bounds = array<i64: 16, 32>}, {pipeline_mode = #tpu.pipeline_mode<synchronous>, transform_indices = @transform_1, window_bounds = array<i64: 32, 128>}, {pipeline_mode = #tpu.pipeline_mode<synchronous>, transform_indices = @transform_2, window_bounds = array<i64: 1, 128>}, {transform_indices = @transform_3, window_bounds = array<i64: 16, 128>}]} {
    %c0 = arith.constant 0 : index
    %c0_0 = arith.constant 0 : index
    %0 = vector.load %arg1[%c0, %c0_0] : memref<16x32xbf16, #tpu.memory_space<vmem>>, vector<16x32xbf16>
    %c0_1 = arith.constant 0 : index
    %c0_2 = arith.constant 0 : index
    %1 = vector.load %arg2[%c0_1, %c0_2] : memref<32x128xbf16, #tpu.memory_space<vmem>>, vector<32x128xbf16>
    %cst = arith.constant dense<0.000000e+00> : vector<16x128xf32>
    %2 = tpu.matmul %0, %1, %cst {dimension_numbers = #tpu.dot_dimension_numbers<[1], [0], [0], [1], [0, 0, 1, 1], [], []>} : vector<16x32xbf16>, vector<32x128xbf16>, vector<16x128xf32> -> vector<16x128xf32>
    %c0_3 = arith.constant 0 : index
    %c0_4 = arith.constant 0 : index
    %3 = vector.load %arg3[%c0_3, %c0_4] : memref<1x128xf32, #tpu.memory_space<vmem>>, vector<1x128xf32>
    %4 = vector.broadcast %3 : vector<1x128xf32> to vector<16x128xf32>
    %5 = arith.addf %2, %4 : vector<16x128xf32>
    %cst_5 = arith.constant 5.000000e-01 : f32
    %6 = vector.broadcast %cst_5 : f32 to vector<16x128xf32>
    %7 = arith.mulf %5, %6 : vector<16x128xf32>
    %cst_6 = arith.constant 0.707106769 : f32
    %8 = vector.broadcast %cst_6 : f32 to vector<16x128xf32>
    %9 = arith.mulf %5, %8 : vector<16x128xf32>
    %10 = math.erf %9 : vector<16x128xf32>
    %cst_7 = arith.constant 1.000000e+00 : f32
    %11 = vector.broadcast %cst_7 : f32 to vector<16x128xf32>
    %12 = arith.addf %11, %10 : vector<16x128xf32>
    %13 = arith.mulf %7, %12 : vector<16x128xf32>
    %c0_8 = arith.constant 0 : index
    %c0_9 = arith.constant 0 : index
    %14 = vector.load %arg4[%c0_8, %c0_9] : memref<16x128xf32, #tpu.memory_space<vmem>>, vector<16x128xf32>
    tpu.vector_store %arg4[%c0_8, %c0_9], %13 {strides = array<i32>} : memref<16x128xf32, #tpu.memory_space<vmem>>, vector<16x128xf32>,
    return
  }
  func.func @transform_0(%arg0: i32) -> (i32, i32) {
    %c0_i32 = arith.constant 0 : i32
    %c0_i32_0 = arith.constant 0 : i32
    return %arg0, %c0_i32 : i32, i32
  }
  func.func @transform_1(%arg0: i32) -> (i32, i32) {
    %c0_i32 = arith.constant 0 : i32
    %c0_i32_0 = arith.constant 0 : i32
    %c0_i32_1 = arith.constant 0 : i32
    return %c0_i32, %c0_i32_0 : i32, i32
  }
  func.func @transform_2(%arg0: i32) -> (i32, i32) {
    %c0_i32 = arith.constant 0 : i32
    %c0_i32_0 = arith.constant 0 : i32
    %c0_i32_1 = arith.constant 0 : i32
    return %c0_i32, %c0_i32_0 : i32, i32
  }
  func.func @transform_3(%arg0: i32) -> (i32, i32) {
    %c0_i32 = arith.constant 0 : i32
    %c0_i32_0 = arith.constant 0 : i32
    return %arg0, %c0_i32 : i32, i32
  }
}

module attributes {stable_mosaic.version = 11 : i64} {
  func.func @_intermediate_kernel(%arg0: i32, %arg1: memref<16x32xbf16, #tpu.memory_space<vmem>>, %arg2: memref<32x128xbf16, #tpu.memory_space<vmem>>, %arg3: memref<1x128xf32, #tpu.memory_space<vmem>>, %arg4: memref<16x128xf32, #tpu.memory_space<vmem>>) attributes {dimension_semantics = [#tpu.dimension_semantics<parallel>], iteration_bounds = array<i64: 1>, scalar_prefetch = 0 : i64, scratch_operands = 0 : i64, tpu.core_type = #tpu.core_type<tc>, window_params = [{transform_indices = @transform_0, window_bounds = array<i64: 16, 32>}, {pipeline_mode = #tpu.pipeline_mode<synchronous>, transform_indices = @transform_1, window_bounds = array<i64: 32, 128>}, {pipeline_mode = #tpu.pipeline_mode<synchronous>, transform_indices = @transform_2, window_bounds = array<i64: 1, 128>}, {transform_indices = @transform_3, window_bounds = array<i64: 16, 128>}]} {
    %c0 = arith.constant 0 : index
    %c0_0 = arith.constant 0 : index
    %0 = vector.load %arg1[%c0, %c0_0] : memref<16x32xbf16, #tpu.memory_space<vmem>>, vector<16x32xbf16>
    %c0_1 = arith.constant 0 : index
    %c0_2 = arith.constant 0 : index
    %1 = vector.load %arg2[%c0_1, %c0_2] : memref<32x128xbf16, #tpu.memory_space<vmem>>, vector<32x128xbf16>
    %cst = arith.constant dense<0.000000e+00> : vector<16x128xf32>
    %2 = tpu.matmul %0, %1, %cst {dimension_numbers = #tpu.dot_dimension_numbers<[1], [0], [0], [1], [0, 0, 1, 1], [], []>} : vector<16x32xbf16>, vector<32x128xbf16>, vector<16x128xf32> -> vector<16x128xf32>
    %c0_3 = arith.constant 0 : index
    %c0_4 = arith.constant 0 : index
    %3 = vector.load %arg3[%c0_3, %c0_4] : memref<1x128xf32, #tpu.memory_space<vmem>>, vector<1x128xf32>
    %4 = vector.broadcast %3 : vector<1x128xf32> to vector<16x128xf32>
    %5 = arith.addf %2, %4 : vector<16x128xf32>
    %cst_5 = arith.constant 5.000000e-01 : f32
    %6 = vector.broadcast %cst_5 : f32 to vector<16x128xf32>
    %7 = arith.mulf %5, %6 : vector<16x128xf32>
    %cst_6 = arith.constant 0.707106769 : f32
    %8 = vector.broadcast %cst_6 : f32 to vector<16x128xf32>
    %9 = arith.mulf %5, %8 : vector<16x128xf32>
    %10 = math.erf %9 : vector<16x128xf32>
    %cst_7 = arith.constant 1.000000e+00 : f32
    %11 = vector.broadcast %cst_7 : f32 to vector<16x128xf32>
    %12 = arith.addf %11, %10 : vector<16x128xf32>
    %13 = arith.mulf %7, %12 : vector<16x128xf32>
    %c0_8 = arith.constant 0 : index
    %c0_9 = arith.constant 0 : index
    %14 = vector.load %arg4[%c0_8, %c0_9] : memref<16x128xf32, #tpu.memory_space<vmem>>, vector<16x128xf32>
    tpu.vector_store %arg4[%c0_8, %c0_9], %13 {strides = array<i32>} : memref<16x128xf32, #tpu.memory_space<vmem>>, vector<16x128xf32>,
    return
  }
  func.func @transform_0(%arg0: i32) -> (i32, i32) {
    %c0_i32 = arith.constant 0 : i32
    %c0_i32_0 = arith.constant 0 : i32
    return %arg0, %c0_i32 : i32, i32
  }
  func.func @transform_1(%arg0: i32) -> (i32, i32) {
    %c0_i32 = arith.constant 0 : i32
    %c0_i32_0 = arith.constant 0 : i32
    %c0_i32_1 = arith.constant 0 : i32
    return %c0_i32, %c0_i32_0 : i32, i32
  }
  func.func @transform_2(%arg0: i32) -> (i32, i32) {
    %c0_i32 = arith.constant 0 : i32
    %c0_i32_0 = arith.constant 0 : i32
    %c0_i32_1 = arith.constant 0 : i32
    return %c0_i32, %c0_i32_0 : i32, i32
  }
  func.func @transform_3(%arg0: i32) -> (i32, i32) {
    %c0_i32 = arith.constant 0 : i32
    %c0_i32_0 = arith.constant 0 : i32
    return %arg0, %c0_i32 : i32, i32
  }
}

</mosaic_0001>

<bundles_post_ra>
// kernel: tpu_custom_call.1
= control target key start
LH: loop header
LB: loop body
LE: loop exit
PB: predicated region body
PF: predicated region fallthrough
CT: control target
= control target key end

     0   :  { %8 = vsyncpa [#allocation3], 0  ;;  %s321_s0 = inlined_call_operand.hbm [shape: bf16[16,32], index: 0, kind: input, shape index: {}]   ;;  %s322_s1 = inlined_call_operand.hbm [shape: bf16[32,128], index: 1, kind: input, shape index: {}]   ;;  %s323_s2 = inlined_call_operand.vmem [shape: f32[1,128], index: 2, kind: input, shape index: {}]   ;;  %s324_s3 = inlined_call_operand.hbm [shape: f32[16,128], index: 3, kind: output, shape index: {}]  }
   0x1   :  { %9 = vsyncpa [#allocation6], 0 }
   0x2   :  { %10 = vsyncpa [#allocation4], 0  ;;  %s253_s12 = smov [#allocation2]   ;;  %s181_s16 = scalar_lea.hbm %s321_s0, 128 }
   0x3   :  { %s16_s13 = sshll.u32 %s253_s12, 4  ;;  %p182_p0 = scmp.ne.s32.totalorder %s321_s0, %s181_s16  ;;  %s17_s13 = int_to_ptr.vmem [resolvable:$true] %s16_s13 }
   0x4   :  { %p185_p1 = scmp.lt.u32.totalorder %s181_s16, %s321_s0 }
   0x6   :  { %p187_p2 = pnand %p185_p1, %p182_p0 }
   0x8   :  { %190 = shalt.err (!%p187_p2)
}
   0x9   :  { %s191_s21 = scalar_lea.vmem %s17_s13, 128  ;;  %p196_p4 = scmp.lt.s32.totalorder %s17_s13, %s17_s13 }
   0xa   :  { %p192_p3 = scmp.ne.s32.totalorder %s17_s13, %s191_s21  ;;  %p197_p5 = scmp.lt.s32.totalorder %s191_s21, %s191_s21 }
   0xc   :  { %p198_p6 = por %p197_p5, %p196_p4 }
   0xe   :  { %p199_p7 = pnand %p198_p6, %p192_p3 }
  0x10   :  { %202 = shalt.err (!%p199_p7)
}
  0x11   :  { %s254_s22 = smov 64   ;;  %s255_s23 = smov 4  }
  0x12   :  { %22 = dma.hbm_to_vmem [thread:$0]  %s321_s0, 128, %s17_s13, [#allocation3], %s254_s22, %s254_s22, %s255_s23  }
  0x13   :  { %s256_s26 = smov [#allocation5]   ;;  %s203_s30 = scalar_lea.hbm %s322_s1, 256 }
  0x14   :  { %s28_s27 = sshll.u32 %s256_s26, 4  ;;  %p204_p8 = scmp.ne.s32.totalorder %s322_s1, %s203_s30  ;;  %s29_s27 = int_to_ptr.vmem [resolvable:$true] %s28_s27 }
  0x15   :  { %p207_p9 = scmp.lt.u32.totalorder %s203_s30, %s322_s1 }
  0x17   :  { %p209_p10 = pnand %p207_p9, %p204_p8 }
  0x19   :  { %212 = shalt.err (!%p209_p10)
}
  0x1a   :  { %s213_s8 = scalar_lea.vmem %s29_s27, 256  ;;  %p218_p12 = scmp.lt.s32.totalorder %s29_s27, %s29_s27 }
  0x1b   :  { %p214_p11 = scmp.ne.s32.totalorder %s29_s27, %s213_s8  ;;  %p219_p13 = scmp.lt.s32.totalorder %s213_s8, %s213_s8 }
  0x1d   :  { %p220_p0 = por %p219_p13, %p218_p12 }
  0x1f   :  { %p221_p1 = pnand %p220_p0, %p214_p11 }
  0x21   :  { %224 = shalt.err (!%p221_p1)
}
  0x22   :  { %34 = dma.hbm_to_vmem [thread:$0]  %s322_s1, 256, %s29_s27, [#allocation6], %s254_s22, %s254_s22, %s255_s23  }
  0x23   :  { %247 = dma.done.wait [#allocation3], 128  }
  0x24   :  { %248 = vsyncadd [#allocation3], 4294967168 }
  0x25   :  { %249 = dma.done.wait [#allocation6], 256  }
  0x26   :  { %250 = vsyncadd [#allocation6], 4294967040  ;;  %v257_v0 = vmov 0.0   ;;  %vm258_vm0 = vmmov 0   ;;  %v174_v1 = vld [vmem:[#allocation5] sm:$0xff]   ;;  %v175_v2 = vld [vmem:[#allocation5 + $0x8] sm:$0xff]  }
  0x27   :  { %157 = vmatprep.subr.bf16.mxu0 %v257_v0  ;;  %161 = vmatprep.mubr.msk.bf16.mxu0 %vm258_vm0, %v257_v0  ;;  %v176_v3 = vld [vmem:[#allocation2] sm:$0xff]   ;;  %vm74_vm1 = vcmask 261120   ;;  %s259_s1 = smov [#allocation7]  }
  0x28   :  { %158 = vmatpush3.bf16.msra.mxu0 %v174_v1  ;;  %v149_v4 = vld [vmem:[%s323_s2] ss:$0 sm:$0xff]  ;;  %s136_s12 = sshll.u32 %s259_s1, 4  ;;  %s137_s12 = int_to_ptr.vmem [resolvable:$true] %s136_s12 }
  0x29   :  { %159 = vmatprep.subr.bf16.mxu0 %v257_v0  ;;  %s225_s2 = scalar_lea.vmem %s137_s12, 256  ;;  %p230_p3 = scmp.lt.s32.totalorder %s137_s12, %s137_s12 }
  0x2a   :  { %p226_p2 = scmp.ne.s32.totalorder %s137_s12, %s225_s2  ;;  %p231_p4 = scmp.lt.s32.totalorder %s225_s2, %s225_s2 }
  0x2c   :  { %160 = vmatpush3.bf16.msra.mxu0 %v175_v2  ;;  %p232_p5 = por %p231_p4, %p230_p3 }
  0x2e   :  { %p233_p6 = pnand %p232_p5, %p226_p2 }
  0x2f   :  { %162 = vmatmul.mubr.msk.bf16.vlgmr.msra.gmra.mrb[0].mxu0 %vm74_vm1, %v176_v3 }
 0x102   :  { %v112_v5 = vpop.f32.mrb[0].mxu0 }
 0x103   :  { %v113_v6 = vadd.f32 %v149_v4, %v112_v5  ;;  %v163_v7 = vpop.f32.mrb[1].mxu0 }
 0x104   :  { %v115_v8 = vpop.f32.mrb[2].mxu0 }
 0x105   :  { %v121_v9 = vmul.f32 0.70710677, %v113_v6  ;;  %v116_v10 = vadd.f32 %v149_v4, %v115_v8  ;;  %v164_v11 = vpop.f32.mrb[3].mxu0  ;;  %v119_v14 = vmul.f32 0.5, %v113_v6 }
 0x107   :  { %177 = verf.f32 %v121_v9  ;;  %v122_v12 = vmul.f32 0.70710677, %v116_v10  ;;  %v120_v18 = vmul.f32 0.5, %v116_v10 }
 0x109   :  { %179 = verf.f32 %v122_v12 }
 0x111   :  { %v178_v13 = vpop.eup %177 }
 0x112   :  { %v125_v15 = vadd.f32 1.0, %v178_v13 }
 0x113   :  { %v180_v16 = vpop.eup %179 }
 0x114   :  { %v127_v17 = vmul.f32 %v125_v15, %v119_v14  ;;  %v126_v19 = vadd.f32 1.0, %v180_v16 }
 0x116   :  { %129 = vst [vmem:[#allocation7] sm:$0xff] %v127_v17  ;;  %v128_v20 = vmul.f32 %v126_v19, %v120_v18 }
 0x118   :  { %130 = vst [vmem:[#allocation7 + $0x8] sm:$0xff] %v128_v20 }
 0x119   :  { %236 = shalt.err (!%p233_p6)
}
 0x11a   :  { %s237_s15 = scalar_lea.hbm %s324_s3, 256 }
 0x11b   :  { %p238_p7 = scmp.ne.s32.totalorder %s324_s3, %s237_s15  ;;  %p241_p8 = scmp.lt.u32.totalorder %s237_s15, %s324_s3 }
 0x11d   :  { %p243_p9 = pnand %p241_p8, %p238_p7 }
 0x11f   :  { %246 = shalt.err (!%p243_p9)
}
 0x120   :  { %s260_s20 = smov 128   ;;  %s261_s21 = smov 8  }
 0x121   :  { %142 = dma.vmem_to_hbm [thread:$0]  %s137_s12, 256, %s324_s3, [#allocation4], %s260_s20, %s260_s20, %s261_s21  }
 0x122   :  { %251 = dma.done.wait [#allocation4], 256  }
 0x123   :  { %252 = vsyncadd [#allocation4], 4294967040 }
 0x124   :  { %146 = vsyncpa [#allocation3], 1 }
 0x125   :  { %147 = vsyncpa [#allocation6], 1 }
 0x126   :  { %148 = vsyncpa [#allocation4], 1 }

// kernel: tpu_custom_call.1
= control target key start
LH: loop header
LB: loop body
LE: loop exit
PB: predicated region body
PF: predicated region fallthrough
CT: control target
= control target key end

     0   :  { %8 = vsyncpa [#allocation3], 0  ;;  %s321_s0 = inlined_call_operand.hbm [shape: bf16[16,32], index: 0, kind: input, shape index: {}]   ;;  %s322_s1 = inlined_call_operand.hbm [shape: bf16[32,128], index: 1, kind: input, shape index: {}]   ;;  %s323_s2 = inlined_call_operand.vmem [shape: f32[1,128], index: 2, kind: input, shape index: {}]   ;;  %s324_s3 = inlined_call_operand.hbm [shape: f32[16,128], index: 3, kind: output, shape index: {}]  }
   0x1   :  { %9 = vsyncpa [#allocation6], 0 }
   0x2   :  { %10 = vsyncpa [#allocation4], 0  ;;  %s253_s12 = smov [#allocation2]   ;;  %s181_s16 = scalar_lea.hbm %s321_s0, 128 }
   0x3   :  { %s16_s13 = sshll.u32 %s253_s12, 4  ;;  %p182_p0 = scmp.ne.s32.totalorder %s321_s0, %s181_s16  ;;  %s17_s13 = int_to_ptr.vmem [resolvable:$true] %s16_s13 }
   0x4   :  { %p185_p1 = scmp.lt.u32.totalorder %s181_s16, %s321_s0 }
   0x6   :  { %p187_p2 = pnand %p185_p1, %p182_p0 }
   0x8   :  { %190 = shalt.err (!%p187_p2)
}
   0x9   :  { %s191_s21 = scalar_lea.vmem %s17_s13, 128  ;;  %p196_p4 = scmp.lt.s32.totalorder %s17_s13, %s17_s13 }
   0xa   :  { %p192_p3 = scmp.ne.s32.totalorder %s17_s13, %s191_s21  ;;  %p197_p5 = scmp.lt.s32.totalorder %s191_s21, %s191_s21 }
   0xc   :  { %p198_p6 = por %p197_p5, %p196_p4 }
   0xe   :  { %p199_p7 = pnand %p198_p6, %p192_p3 }
  0x10   :  { %202 = shalt.err (!%p199_p7)
}
  0x11   :  { %s254_s22 = smov 64   ;;  %s255_s23 = smov 4  }
  0x12   :  { %22 = dma.hbm_to_vmem [thread:$0]  %s321_s0, 128, %s17_s13, [#allocation3], %s254_s22, %s254_s22, %s255_s23  }
  0x13   :  { %s256_s26 = smov [#allocation5]   ;;  %s203_s30 = scalar_lea.hbm %s322_s1, 256 }
  0x14   :  { %s28_s27 = sshll.u32 %s256_s26, 4  ;;  %p204_p8 = scmp.ne.s32.totalorder %s322_s1, %s203_s30  ;;  %s29_s27 = int_to_ptr.vmem [resolvable:$true] %s28_s27 }
  0x15   :  { %p207_p9 = scmp.lt.u32.totalorder %s203_s30, %s322_s1 }
  0x17   :  { %p209_p10 = pnand %p207_p9, %p204_p8 }
  0x19   :  { %212 = shalt.err (!%p209_p10)
}
  0x1a   :  { %s213_s8 = scalar_lea.vmem %s29_s27, 256  ;;  %p218_p12 = scmp.lt.s32.totalorder %s29_s27, %s29_s27 }
  0x1b   :  { %p214_p11 = scmp.ne.s32.totalorder %s29_s27, %s213_s8  ;;  %p219_p13 = scmp.lt.s32.totalorder %s213_s8, %s213_s8 }
  0x1d   :  { %p220_p0 = por %p219_p13, %p218_p12 }
  0x1f   :  { %p221_p1 = pnand %p220_p0, %p214_p11 }
  0x21   :  { %224 = shalt.err (!%p221_p1)
}
  0x22   :  { %34 = dma.hbm_to_vmem [thread:$0]  %s322_s1, 256, %s29_s27, [#allocation6], %s254_s22, %s254_s22, %s255_s23  }
  0x23   :  { %247 = dma.done.wait [#allocation3], 128  }
  0x24   :  { %248 = vsyncadd [#allocation3], 4294967168 }
  0x25   :  { %249 = dma.done.wait [#allocation6], 256  }
  0x26   :  { %250 = vsyncadd [#allocation6], 4294967040  ;;  %v257_v0 = vmov 0.0   ;;  %vm258_vm0 = vmmov 0   ;;  %v174_v1 = vld [vmem:[#allocation5] sm:$0xff]   ;;  %v175_v2 = vld [vmem:[#allocation5 + $0x8] sm:$0xff]  }
  0x27   :  { %157 = vmatprep.subr.bf16.mxu0 %v257_v0  ;;  %161 = vmatprep.mubr.msk.bf16.mxu0 %vm258_vm0, %v257_v0  ;;  %v176_v3 = vld [vmem:[#allocation2] sm:$0xff]   ;;  %vm74_vm1 = vcmask 261120   ;;  %s259_s1 = smov [#allocation7]  }
  0x28   :  { %158 = vmatpush3.bf16.msra.mxu0 %v174_v1  ;;  %v149_v4 = vld [vmem:[%s323_s2] ss:$0 sm:$0xff]  ;;  %s136_s12 = sshll.u32 %s259_s1, 4  ;;  %s137_s12 = int_to_ptr.vmem [resolvable:$true] %s136_s12 }
  0x29   :  { %159 = vmatprep.subr.bf16.mxu0 %v257_v0  ;;  %s225_s2 = scalar_lea.vmem %s137_s12, 256  ;;  %p230_p3 = scmp.lt.s32.totalorder %s137_s12, %s137_s12 }
  0x2a   :  { %p226_p2 = scmp.ne.s32.totalorder %s137_s12, %s225_s2  ;;  %p231_p4 = scmp.lt.s32.totalorder %s225_s2, %s225_s2 }
  0x2c   :  { %160 = vmatpush3.bf16.msra.mxu0 %v175_v2  ;;  %p232_p5 = por %p231_p4, %p230_p3 }
  0x2e   :  { %p233_p6 = pnand %p232_p5, %p226_p2 }
  0x2f   :  { %162 = vmatmul.mubr.msk.bf16.vlgmr.msra.gmra.mrb[0].mxu0 %vm74_vm1, %v176_v3 }
 0x102   :  { %v112_v5 = vpop.f32.mrb[0].mxu0 }
 0x103   :  { %v113_v6 = vadd.f32 %v149_v4, %v112_v5  ;;  %v163_v7 = vpop.f32.mrb[1].mxu0 }
 0x104   :  { %v115_v8 = vpop.f32.mrb[2].mxu0 }
 0x105   :  { %v121_v9 = vmul.f32 0.70710677, %v113_v6  ;;  %v116_v10 = vadd.f32 %v149_v4, %v115_v8  ;;  %v164_v11 = vpop.f32.mrb[3].mxu0  ;;  %v119_v14 = vmul.f32 0.5, %v113_v6 }
 0x107   :  { %177 = verf.f32 %v121_v9  ;;  %v122_v12 = vmul.f32 0.70710677, %v116_v10  ;;  %v120_v18 = vmul.f32 0.5, %v116_v10 }
 0x109   :  { %179 = verf.f32 %v122_v12 }
 0x111   :  { %v178_v13 = vpop.eup %177 }
 0x112   :  { %v125_v15 = vadd.f32 1.0, %v178_v13 }
 0x113   :  { %v180_v16 = vpop.eup %179 }
 0x114   :  { %v127_v17 = vmul.f32 %v125_v15, %v119_v14  ;;  %v126_v19 = vadd.f32 1.0, %v180_v16 }
 0x116   :  { %129 = vst [vmem:[#allocation7] sm:$0xff] %v127_v17  ;;  %v128_v20 = vmul.f32 %v126_v19, %v120_v18 }
 0x118   :  { %130 = vst [vmem:[#allocation7 + $0x8] sm:$0xff] %v128_v20 }
 0x119   :  { %236 = shalt.err (!%p233_p6)
}
 0x11a   :  { %s237_s15 = scalar_lea.hbm %s324_s3, 256 }
 0x11b   :  { %p238_p7 = scmp.ne.s32.totalorder %s324_s3, %s237_s15  ;;  %p241_p8 = scmp.lt.u32.totalorder %s237_s15, %s324_s3 }
 0x11d   :  { %p243_p9 = pnand %p241_p8, %p238_p7 }
 0x11f   :  { %246 = shalt.err (!%p243_p9)
}
 0x120   :  { %s260_s20 = smov 128   ;;  %s261_s21 = smov 8  }
 0x121   :  { %142 = dma.vmem_to_hbm [thread:$0]  %s137_s12, 256, %s324_s3, [#allocation4], %s260_s20, %s260_s20, %s261_s21  }
 0x122   :  { %251 = dma.done.wait [#allocation4], 256  }
 0x123   :  { %252 = vsyncadd [#allocation4], 4294967040 }
 0x124   :  { %146 = vsyncpa [#allocation3], 1 }
 0x125   :  { %147 = vsyncpa [#allocation6], 1 }
 0x126   :  { %148 = vsyncpa [#allocation4], 1 }

</bundles_post_ra>
